<compile_context>
chip_gen: v5e
topology: v5e:2x2
jax: 0.10.0
libtpu: 0.0.40
codegen_flags: <defaults>
</compile_context>

<pallas_src>
import functools

import jax
import jax.numpy as jnp
from jax import lax
from jax.experimental import pallas as pl
from jax.experimental.pallas import tpu as pltpu


# --------------------------------------------------------------------------- tiling helpers
def _pool_tiles(b: int, s: int, d: int, itemsize: int,
                block_bytes: int = 4 * 1024 * 1024):
    """Pick (tb, ts) so one input block is ~block_bytes (safe under v5e's 16 MiB
    default scoped VMEM with double buffering, and well under v7x's 64 MiB).

    tb: full batch if B <= 8, otherwise 8 (sublane-aligned, cdiv grid).
    ts: full sequence if it fits, otherwise a multiple of 8 (cdiv grid; the
        final partial block is masked inside the kernel).
    """
    tb = b if b <= 8 else 8
    row_bytes = max(1, d * itemsize)
    ts_target = max(8, block_bytes // max(1, tb * row_bytes))
    if s <= ts_target:
        ts = s
    else:
        ts = (ts_target // 8) * 8
    return tb, ts


# --------------------------------------------------------------------------- stage 1: pooling
def _pool_sum_kernel(x_ref, o_ref, *, rem):
    """Sum over the sequence axis with f32 accumulation.

    x_ref: (tb, ts, D)   o_ref: (tb, D) f32, resident across the seq grid axis.
    rem  : static remainder S % ts; if nonzero, only the final sequence block
           is masked (non-final blocks pay zero masking cost).
    """
    j = pl.program_id(1)

    @pl.when(j == 0)
    def _():
        o_ref[...] = jnp.zeros_like(o_ref)

    if rem == 0:
        o_ref[...] += jnp.sum(x_ref[...].astype(jnp.float32), axis=1)
    else:
        last = pl.num_programs(1) - 1

        @pl.when(j != last)
        def _():
            o_ref[...] += jnp.sum(x_ref[...].astype(jnp.float32), axis=1)

        @pl.when(j == last)
        def _():
            x = x_ref[...].astype(jnp.float32)
            idx = lax.broadcasted_iota(jnp.int32, x.shape, 1)
            x = jnp.where(idx < rem, x, 0.0)
            o_ref[...] += jnp.sum(x, axis=1)


def _pool_sum(x, block_bytes: int = 4 * 1024 * 1024):
    """(B, S, D) -> (B, D) f32 sum over the sequence axis (pipelined reduction)."""
    b, s, d = x.shape
    itemsize = jnp.dtype(x.dtype).itemsize
    tb, ts = _pool_tiles(b, s, d, itemsize, block_bytes)
    grid = (pl.cdiv(b, tb), pl.cdiv(s, ts))
    rem = s % ts if ts < s else 0

    cost = pl.CostEstimate(
        flops=b * s * d,                       # adds
        transcendentals=0,
        bytes_accessed=b * s * d * itemsize + b * d * 4,
    )

    return pl.pallas_call(
        functools.partial(_pool_sum_kernel, rem=rem),
        out_shape=jax.ShapeDtypeStruct((b, d), jnp.float32),
        grid_spec=pltpu.PrefetchScalarGridSpec(
            num_scalar_prefetch=0,
            grid=grid,
            in_specs=[pl.BlockSpec((tb, ts, d), lambda i, j: (i, j, 0))],
            out_specs=pl.BlockSpec((tb, d), lambda i, j: (i, 0)),
        ),
        compiler_params=pltpu.CompilerParams(
            dimension_semantics=("parallel", "arbitrary")),
        cost_estimate=cost,
    )(x)


# --------------------------------------------------------------------------- stage 2: similarity
_CONTRACT_LAST_FIRST = (((1,), (0,)), ((), ()))   # (B,D) x (D,K) -> (B,K)
_CONTRACT_LAST_LAST = (((1,), (1,)), ((), ()))    # (B1,K) x (B2,K) -> (B1,B2)


def _sim_param_cross_kernel(scale, txt_ref, cld_ref, p_ref, o_ref):
    p = p_ref[...]                                                    # (D, K)
    tq = lax.dot_general(txt_ref[...], p, _CONTRACT_LAST_FIRST,
                         preferred_element_type=jnp.float32)          # (B1, K)
    cq = lax.dot_general(cld_ref[...], p, _CONTRACT_LAST_FIRST,
                         preferred_element_type=jnp.float32)          # (B2, K)
    sim = lax.dot_general(tq, cq, _CONTRACT_LAST_LAST,
                          preferred_element_type=jnp.float32)         # (B1, B2)
    o_ref[...] = (sim * scale).astype(o_ref.dtype)


def _sim_param_pair_kernel(scale, txt_ref, cld_ref, p_ref, o_ref):
    p = p_ref[...]
    tq = lax.dot_general(txt_ref[...], p, _CONTRACT_LAST_FIRST,
                         preferred_element_type=jnp.float32)          # (B, K)
    cq = lax.dot_general(cld_ref[...], p, _CONTRACT_LAST_FIRST,
                         preferred_element_type=jnp.float32)          # (B, K)
    o_ref[...] = (jnp.sum(tq * cq, axis=-1, keepdims=True) * scale
                  ).astype(o_ref.dtype)                               # (B, 1)


def _sim_noparam_cross_kernel(scale, txt_ref, cld_ref, o_ref):
    sim = lax.dot_general(txt_ref[...], cld_ref[...], _CONTRACT_LAST_LAST,
                          preferred_element_type=jnp.float32)         # (B1, B2)
    o_ref[...] = (sim * scale).astype(o_ref.dtype)


def _sim_noparam_pair_kernel(scale, txt_ref, cld_ref, o_ref):
    o_ref[...] = (jnp.sum(txt_ref[...] * cld_ref[...], axis=-1, keepdims=True)
                  * scale).astype(o_ref.dtype)                        # (B, 1)


# --------------------------------------------------------------------------- wrapper
@functools.partial(jax.jit, static_argnames=("cross_sim",))
def global_similarity(txt, cld, param=None, cross_sim=False):
    """JAX/Pallas equivalent of GlobalSimilarity.forward (pool='mean').

    txt  : (B1, S1, D) float
    cld  : (B2, S2, D) float
    param: (D, K) or None
    returns (B1, B2) if cross_sim else (B1,)  [requires B1 == B2 when not cross]
    """
    b1, s1, d = txt.shape
    b2, s2, d2 = cld.shape
    assert d == d2, "txt / cld feature dims must match"
    if not cross_sim:
        assert b1 == b2, "cross_sim=False requires matching batch sizes"

    # Stage 1: pipelined sequence-sum pooling (mean scale folded into stage 2).
    txt_sum = _pool_sum(txt)                     # (B1, D) f32
    cld_sum = _pool_sum(cld)                     # (B2, D) f32
    scale = 1.0 / float(s1 * s2)

    vmem = pl.BlockSpec(memory_space=pltpu.MemorySpace.VMEM)

    if cross_sim:
        out_shape = jax.ShapeDtypeStruct((b1, b2), jnp.float32)
        if param is None:
            kernel = functools.partial(_sim_noparam_cross_kernel, scale)
            args = (txt_sum, cld_sum)
        else:
            kernel = functools.partial(_sim_param_cross_kernel, scale)
            args = (txt_sum, cld_sum, param)
        return pl.pallas_call(
            kernel, out_shape=out_shape,
            in_specs=[vmem] * len(args), out_specs=vmem,
        )(*args)                                  # (B1, B2)

    out_shape = jax.ShapeDtypeStruct((b1, 1), jnp.float32)
    if param is None:
        kernel = functools.partial(_sim_noparam_pair_kernel, scale)
        args = (txt_sum, cld_sum)
    else:
        kernel = functools.partial(_sim_param_pair_kernel, scale)
        args = (txt_sum, cld_sum, param)
    sim = pl.pallas_call(
        kernel, out_shape=out_shape,
        in_specs=[vmem] * len(args), out_specs=vmem,
    )(*args)                                      # (B1, 1)
    return sim[:, 0]                              # (B1,)


# --------------------------------------------------------------------------- pure-JAX reference
def _reference(txt, cld, param, cross_sim):
    txt_p = jnp.mean(txt, axis=-2)
    cld_p = jnp.mean(cld, axis=-2)
    if param is not None:
        metric = param @ param.T
    else:
        metric = jnp.eye(txt.shape[-1], dtype=txt.dtype)
    if cross_sim:
        return jnp.einsum("ad,de,be->ab", txt_p, metric, cld_p)
    return jnp.einsum("ad,de,ae->a", txt_p, metric, cld_p)


# --------------------------------------------------------------------------- main
if __name__ == "__main__":
    key = jax.random.PRNGKey(0)
    k_txt, k_cld, k_param, k_mask = jax.random.split(key, 4)

    B1, S1 = 2, 8        # txt: b1 texts, s1 tokens
    B2, S2 = 2, 12       # cld: b2 clouds, s2 points
    D, K = 32, 16        # in_size, rank of metric

    txt = jax.random.normal(k_txt, (B1, S1, D), dtype=jnp.float32)
    cld = jax.random.normal(k_cld, (B2, S2, D), dtype=jnp.float32)
    # deterministic parameter init: randn(in_size, k) * 0.1
    param = jax.random.normal(k_param, (D, K), dtype=jnp.float32) * 0.1

    # cross-pair similarity (b1, b2)
    sim_cross = global_similarity(txt, cld, param, cross_sim=True)
    # paired similarity (b1,)
    sim_pair = global_similarity(txt, cld, param, cross_sim=False)
    # param=None paths
    sim_noparam_cross = global_similarity(txt, cld, None, cross_sim=True)
    sim_noparam_pair = global_similarity(txt, cld, None, cross_sim=False)
    jax.block_until_ready((sim_cross, sim_pair, sim_noparam_cross, sim_noparam_pair))

    # numerical checks against pure-JAX reference
    ref_cross = _reference(txt, cld, param, cross_sim=True)
    ref_pair = _reference(txt, cld, param, cross_sim=False)
    ref_np_cross = _reference(txt, cld, None, cross_sim=True)
    ref_np_pair = _reference(txt, cld, None, cross_sim=False)

    assert sim_cross.shape == (B1, B2)
    assert sim_pair.shape == (B1,)
    assert jnp.allclose(sim_cross, ref_cross, atol=1e-4, rtol=1e-4)
    assert jnp.allclose(sim_pair, ref_pair, atol=1e-4, rtol=1e-4)
    assert jnp.allclose(sim_noparam_cross, ref_np_cross, atol=1e-4, rtol=1e-4)
    assert jnp.allclose(sim_noparam_pair, ref_np_pair, atol=1e-4, rtol=1e-4)

    # exercise the masked (non-divisible sequence tile) pooling path by forcing
    # a small block budget: S=13, ts=8 -> final block has a remainder of 5.
    xm = jax.random.normal(k_mask, (2, 13, D), dtype=jnp.float32)
    pooled = _pool_sum(xm, block_bytes=2048)
    jax.block_until_ready(pooled)
    assert jnp.allclose(pooled, jnp.sum(xm, axis=1), atol=1e-4, rtol=1e-4)

    print("KERNEL_OK")
</pallas_src>

<mosaic_0001>
module attributes {stable_mosaic.version = 11 : i64} {
  func.func @_pool_sum_kernel(%arg0: i32, %arg1: i32, %arg2: memref<2x8x32xf32, #tpu.memory_space<vmem>>, %arg3: memref<2x32xf32, #tpu.memory_space<vmem>>) attributes {dimension_semantics = [#tpu.dimension_semantics<parallel>, #tpu.dimension_semantics<arbitrary>], iteration_bounds = array<i64: 1, 1>, scalar_prefetch = 0 : i64, scratch_operands = 0 : i64, tpu.core_type = #tpu.core_type<tc>, window_params = [{transform_indices = @transform_0, window_bounds = array<i64: 2, 8, 32>}, {transform_indices = @transform_1, window_bounds = array<i64: 2, 32>}]} {
    %c0_i32 = arith.constant 0 : i32
    %0 = arith.cmpi eq, %arg1, %c0_i32 : i32
    %1 = arith.extui %0 : i1 to i32
    %c0_i32_0 = arith.constant 0 : i32
    %2 = arith.cmpi ne, %1, %c0_i32_0 : i32
    scf.if %2 {
      %cst_7 = arith.constant 0.000000e+00 : f32
      %8 = vector.broadcast %cst_7 : f32 to vector<2x32xf32>
      %c0_8 = arith.constant 0 : index
      %c0_9 = arith.constant 0 : index
      %9 = vector.load %arg3[%c0_8, %c0_9] : memref<2x32xf32, #tpu.memory_space<vmem>>, vector<2x32xf32>
      tpu.vector_store %arg3[%c0_8, %c0_9], %8 {strides = array<i32>} : memref<2x32xf32, #tpu.memory_space<vmem>>, vector<2x32xf32>,
    } else {
    }
    %c0 = arith.constant 0 : index
    %c0_1 = arith.constant 0 : index
    %3 = vector.load %arg3[%c0, %c0_1] : memref<2x32xf32, #tpu.memory_space<vmem>>, vector<2x32xf32>
    %c0_2 = arith.constant 0 : index
    %c0_3 = arith.constant 0 : index
    %c0_4 = arith.constant 0 : index
    %4 = vector.load %arg2[%c0_2, %c0_3, %c0_4] : memref<2x8x32xf32, #tpu.memory_space<vmem>>, vector<2x8x32xf32>
    %cst = arith.constant dense<0.000000e+00> : vector<2x32xf32>
    %5 = vector.multi_reduction <add>, %4, %cst [1] : vector<2x8x32xf32> to vector<2x32xf32>
    %6 = arith.addf %3, %5 : vector<2x32xf32>
    %c0_5 = arith.constant 0 : index
    %c0_6 = arith.constant 0 : index
    %7 = vector.load %arg3[%c0_5, %c0_6] : memref<2x32xf32, #tpu.memory_space<vmem>>, vector<2x32xf32>
    tpu.vector_store %arg3[%c0_5, %c0_6], %6 {strides = array<i32>} : memref<2x32xf32, #tpu.memory_space<vmem>>, vector<2x32xf32>,
    return
  }
  func.func @transform_0(%arg0: i32, %arg1: i32) -> (i32, i32, i32) {
    %c0_i32 = arith.constant 0 : i32
    %c0_i32_0 = arith.constant 0 : i32
    return %arg0, %arg1, %c0_i32 : i32, i32, i32
  }
  func.func @transform_1(%arg0: i32, %arg1: i32) -> (i32, i32) {
    %c0_i32 = arith.constant 0 : i32
    %c0_i32_0 = arith.constant 0 : i32
    return %arg0, %c0_i32 : i32, i32
  }
}

module attributes {stable_mosaic.version = 11 : i64} {
  func.func @_pool_sum_kernel(%arg0: i32, %arg1: i32, %arg2: memref<2x12x32xf32, #tpu.memory_space<vmem>>, %arg3: memref<2x32xf32, #tpu.memory_space<vmem>>) attributes {dimension_semantics = [#tpu.dimension_semantics<parallel>, #tpu.dimension_semantics<arbitrary>], iteration_bounds = array<i64: 1, 1>, scalar_prefetch = 0 : i64, scratch_operands = 0 : i64, tpu.core_type = #tpu.core_type<tc>, window_params = [{transform_indices = @transform_0, window_bounds = array<i64: 2, 12, 32>}, {transform_indices = @transform_1, window_bounds = array<i64: 2, 32>}]} {
    %c0_i32 = arith.constant 0 : i32
    %0 = arith.cmpi eq, %arg1, %c0_i32 : i32
    %1 = arith.extui %0 : i1 to i32
    %c0_i32_0 = arith.constant 0 : i32
    %2 = arith.cmpi ne, %1, %c0_i32_0 : i32
    scf.if %2 {
      %cst_7 = arith.constant 0.000000e+00 : f32
      %8 = vector.broadcast %cst_7 : f32 to vector<2x32xf32>
      %c0_8 = arith.constant 0 : index
      %c0_9 = arith.constant 0 : index
      %9 = vector.load %arg3[%c0_8, %c0_9] : memref<2x32xf32, #tpu.memory_space<vmem>>, vector<2x32xf32>
      tpu.vector_store %arg3[%c0_8, %c0_9], %8 {strides = array<i32>} : memref<2x32xf32, #tpu.memory_space<vmem>>, vector<2x32xf32>,
    } else {
    }
    %c0 = arith.constant 0 : index
    %c0_1 = arith.constant 0 : index
    %3 = vector.load %arg3[%c0, %c0_1] : memref<2x32xf32, #tpu.memory_space<vmem>>, vector<2x32xf32>
    %c0_2 = arith.constant 0 : index
    %c0_3 = arith.constant 0 : index
    %c0_4 = arith.constant 0 : index
    %4 = vector.load %arg2[%c0_2, %c0_3, %c0_4] : memref<2x12x32xf32, #tpu.memory_space<vmem>>, vector<2x12x32xf32>
    %cst = arith.constant dense<0.000000e+00> : vector<2x32xf32>
    %5 = vector.multi_reduction <add>, %4, %cst [1] : vector<2x12x32xf32> to vector<2x32xf32>
    %6 = arith.addf %3, %5 : vector<2x32xf32>
    %c0_5 = arith.constant 0 : index
    %c0_6 = arith.constant 0 : index
    %7 = vector.load %arg3[%c0_5, %c0_6] : memref<2x32xf32, #tpu.memory_space<vmem>>, vector<2x32xf32>
    tpu.vector_store %arg3[%c0_5, %c0_6], %6 {strides = array<i32>} : memref<2x32xf32, #tpu.memory_space<vmem>>, vector<2x32xf32>,
    return
  }
  func.func @transform_0(%arg0: i32, %arg1: i32) -> (i32, i32, i32) {
    %c0_i32 = arith.constant 0 : i32
    %c0_i32_0 = arith.constant 0 : i32
    return %arg0, %arg1, %c0_i32 : i32, i32, i32
  }
  func.func @transform_1(%arg0: i32, %arg1: i32) -> (i32, i32) {
    %c0_i32 = arith.constant 0 : i32
    %c0_i32_0 = arith.constant 0 : i32
    return %arg0, %c0_i32 : i32, i32
  }
}

module attributes {stable_mosaic.version = 11 : i64} {
  func.func @_sim_param_cross_kernel(%arg0: memref<2x32xf32, #tpu.memory_space<vmem>>, %arg1: memref<2x32xf32, #tpu.memory_space<vmem>>, %arg2: memref<32x16xf32, #tpu.memory_space<vmem>>, %arg3: memref<2x2xf32, #tpu.memory_space<vmem>>) attributes {dimension_semantics = [], scalar_prefetch = 0 : i64, scratch_operands = 0 : i64, tpu.core_type = #tpu.core_type<tc>} {
    %c0 = arith.constant 0 : index
    %c0_0 = arith.constant 0 : index
    %0 = vector.load %arg2[%c0, %c0_0] : memref<32x16xf32, #tpu.memory_space<vmem>>, vector<32x16xf32>
    %c0_1 = arith.constant 0 : index
    %c0_2 = arith.constant 0 : index
    %1 = vector.load %arg0[%c0_1, %c0_2] : memref<2x32xf32, #tpu.memory_space<vmem>>, vector<2x32xf32>
    %cst = arith.constant dense<0.000000e+00> : vector<2x16xf32>
    %2 = tpu.matmul %1, %0, %cst {dimension_numbers = #tpu.dot_dimension_numbers<[1], [0], [0], [1], [0, 0, 1, 1], [], []>} : vector<2x32xf32>, vector<32x16xf32>, vector<2x16xf32> -> vector<2x16xf32>
    %c0_3 = arith.constant 0 : index
    %c0_4 = arith.constant 0 : index
    %3 = vector.load %arg1[%c0_3, %c0_4] : memref<2x32xf32, #tpu.memory_space<vmem>>, vector<2x32xf32>
    %cst_5 = arith.constant dense<0.000000e+00> : vector<2x16xf32>
    %4 = tpu.matmul %3, %0, %cst_5 {dimension_numbers = #tpu.dot_dimension_numbers<[1], [0], [0], [1], [0, 0, 1, 1], [], []>} : vector<2x32xf32>, vector<32x16xf32>, vector<2x16xf32> -> vector<2x16xf32>
    %cst_6 = arith.constant dense<0.000000e+00> : vector<2x2xf32>
    %5 = tpu.matmul %2, %4, %cst_6 {dimension_numbers = #tpu.dot_dimension_numbers<[1], [1], [0], [0], [0, 0, 1, 0], [], []>} : vector<2x16xf32>, vector<2x16xf32>, vector<2x2xf32> -> vector<2x2xf32>
    %cst_7 = arith.constant 0.010416667 : f32
    %6 = vector.broadcast %cst_7 : f32 to vector<2x2xf32>
    %7 = arith.mulf %5, %6 : vector<2x2xf32>
    %c0_8 = arith.constant 0 : index
    %c0_9 = arith.constant 0 : index
    %8 = vector.load %arg3[%c0_8, %c0_9] : memref<2x2xf32, #tpu.memory_space<vmem>>, vector<2x2xf32>
    tpu.vector_store %arg3[%c0_8, %c0_9], %7 {strides = array<i32>} : memref<2x2xf32, #tpu.memory_space<vmem>>, vector<2x2xf32>,
    return
  }
}

</mosaic_0001>

<bundles_post_ra>
// kernel: global_similarity.4
= control target key start
LH: loop header
LB: loop body
LE: loop exit
PB: predicated region body
PF: predicated region fallthrough
CT: control target
= control target key end

     0   :  { %vm12_vm0 = vcmask 254976   ;;  %vm19_vm1 = vcmask 261120   ;;  %vm21_vm2 = vcmask 257024   ;;  %v52_v0 = vmov 0.0   ;;  %s86_s0 = inlined_call_operand.vmem [shape: f32[2,12,32], index: 0, kind: input, shape index: {}]   ;;  %s87_s1 = inlined_call_operand.vmem [shape: f32[2,32], index: 1, kind: output, shape index: {}]  }
   0x1   :  { %13 = vst.msk [vmem:[%s87_s1] sm:$0x3] %vm12_vm0, %v52_v0  ;;  %v15_v1 = vld [vmem:[%s86_s0] sm:$0xff]  ;;  %v16_v2 = vld [vmem:[%s86_s0 + $0x8] sm:$0xf]  ;;  %v17_v3 = vld [vmem:[%s86_s0 + $0x10] sm:$0xff] }
   0x2   :  { %v18_v4 = vld [vmem:[%s86_s0 + $0x18] sm:$0xf]  ;;  %v20_v5 = vsel %vm19_vm1, %v15_v1, 0.0  ;;  %v22_v6 = vsel %vm21_vm2, %v16_v2, 0.0  ;;  %v30_v7 = vsel %vm19_vm1, %v17_v3, 0.0  ;;  %vm41_vm3 = vcmask 1041409  }
   0x3   :  { %v23_v8 = vadd.f32 %v22_v6, %v20_v5  ;;  %v31_v9 = vsel %vm21_vm2, %v18_v4, 0.0 }
   0x4   :  { %v32_v10 = vadd.f32 %v31_v9, %v30_v7 }
   0x5   :  { %v24_v11 = vrot.slane %v23_v8, 4 }
   0x6   :  { %v33_v12 = vrot.slane %v32_v10, 4 }
   0x7   :  { %v25_v13 = vadd.f32 %v24_v11, %v23_v8 }
   0x8   :  { %v34_v14 = vadd.f32 %v33_v12, %v32_v10  ;;  %v14_v22 = vld [vmem:[%s87_s1] sm:$0x3] }
   0x9   :  { %v26_v15 = vrot.slane %v25_v13, 2 }
   0xa   :  { %v35_v16 = vrot.slane %v34_v14, 2 }
   0xb   :  { %v27_v17 = vadd.f32 %v26_v15, %v25_v13 }
   0xc   :  { %v36_v18 = vadd.f32 %v35_v16, %v34_v14 }
   0xd   :  { %v28_v19 = vrot.slane %v27_v17, 1 }
   0xe   :  { %v37_v20 = vrot.slane %v36_v18, 1 }
   0xf   :  { %v29_v21 = vadd.f32 %v28_v19, %v27_v17 }
  0x10   :  { %v38_v23 = vadd.f32 %v37_v20, %v36_v18 }
  0x12   :  { %v42_v24 = vsel %vm41_vm3, %v38_v23, %v29_v21 }
  0x13   :  { %v44_v25 = vadd.f32 %v42_v24, %v14_v22 }
  0x15   :  { %46 = vst.msk [vmem:[%s87_s1] sm:$0x3] %vm12_vm0, %v44_v25 }

// kernel: global_similarity.3
= control target key start
LH: loop header
LB: loop body
LE: loop exit
PB: predicated region body
PF: predicated region fallthrough
CT: control target
= control target key end

     0   :  { %6 = vsyncpa [#allocation3], 0  ;;  %s91_s9 = smov [#allocation2]   ;;  %s92_s11 = smov 128   ;;  %s119_s0 = inlined_call_operand.hbm [shape: f32[2,8,32], index: 0, kind: input, shape index: {}]   ;;  %s120_s1 = inlined_call_operand.vmem [shape: f32[2,32], index: 1, kind: output, shape index: {}]  }
   0x1   :  { %s11_s8 = sshll.u32 %s119_s0, 4  ;;  %s13_s10 = sshll.u32 %s91_s9, 4  ;;  %s12_s8 = int_to_ptr.hbm [resolvable:$true] %s11_s8  ;;  %s14_s10 = int_to_ptr.vmem [resolvable:$true] %s13_s10 }
   0x2   :  { %s93_s12 = smov 8  }
   0x3   :  { %19 = dma.hbm_to_vmem [thread:$0]  %s12_s8, 256, %s14_s10, [#allocation3], %s92_s11, %s92_s11, %s93_s12  }
   0x4   :  { %89 = dma.done.wait [#allocation3], 256  }
   0x5   :  { %90 = vsyncadd [#allocation3], 4294967040  ;;  %vm28_vm0 = vcmask 254976   ;;  %v94_v0 = vmov 0.0   ;;  %vm33_vm1 = vcmask 261120   ;;  %v31_v1 = vld [vmem:[#allocation2] sm:$0xff] }
   0x6   :  { %29 = vst.msk [vmem:[%s120_s1] sm:$0x3] %vm28_vm0, %v94_v0  ;;  %v32_v2 = vld [vmem:[#allocation2 + $0x8] sm:$0xff]  ;;  %v34_v3 = vsel %vm33_vm1, %v31_v1, 0.0  ;;  %vm50_vm2 = vcmask 1041409  }
   0x7   :  { %v41_v4 = vsel %vm33_vm1, %v32_v2, 0.0  ;;  %v35_v5 = vrot.slane %v34_v3, 4 }
   0x8   :  { %v42_v6 = vrot.slane %v41_v4, 4 }
   0x9   :  { %v36_v7 = vadd.f32 %v35_v5, %v34_v3 }
   0xa   :  { %v43_v8 = vadd.f32 %v42_v6, %v41_v4 }
   0xb   :  { %v37_v9 = vrot.slane %v36_v7, 2 }
   0xc   :  { %v44_v10 = vrot.slane %v43_v8, 2 }
   0xd   :  { %v38_v11 = vadd.f32 %v37_v9, %v36_v7  ;;  %v30_v15 = vld [vmem:[%s120_s1] sm:$0x3] }
   0xe   :  { %v45_v12 = vadd.f32 %v44_v10, %v43_v8 }
   0xf   :  { %v39_v13 = vrot.slane %v38_v11, 1 }
  0x10   :  { %v46_v14 = vrot.slane %v45_v12, 1 }
  0x11   :  { %v40_v16 = vadd.f32 %v39_v13, %v38_v11 }
  0x12   :  { %v47_v17 = vadd.f32 %v46_v14, %v45_v12 }
  0x14   :  { %v51_v18 = vsel %vm50_vm2, %v47_v17, %v40_v16 }
  0x15   :  { %v53_v19 = vadd.f32 %v51_v18, %v30_v15 }
  0x17   :  { %55 = vst.msk [vmem:[%s120_s1] sm:$0x3] %vm28_vm0, %v53_v19 }
  0x18   :  { %60 = vsyncpa [#allocation3], 1 }

// kernel: global_similarity.5
= control target key start
LH: loop header
LB: loop body
LE: loop exit
PB: predicated region body
PF: predicated region fallthrough
CT: control target
= control target key end

     0   :  { %s187_s0 = inlined_call_operand.vmem [shape: f32[2,32], index: 0, kind: input, shape index: {}]   ;;  %s188_s1 = inlined_call_operand.vmem [shape: f32[2,32], index: 1, kind: input, shape index: {}]   ;;  %s189_s2 = inlined_call_operand.vmem [shape: f32[32,16], index: 2, kind: input, shape index: {}]   ;;  %s190_s3 = inlined_call_operand.hbm [shape: f32[2,2], index: 3, kind: output, shape index: {}]  }
   0x1   :  { %v18_v0 = vld [vmem:[%s189_s2 + $0x18] sm:$0xff]  ;;  %v17_v1 = vld [vmem:[%s189_s2 + $0x10] sm:$0xff]  ;;  %v16_v2 = vld [vmem:[%s189_s2 + $0x8] sm:$0xff] }
   0x2   :  { %60 = vmatpush.msra.mxu1 %v18_v0  ;;  %36 = vmatpush.msra.mxu0 %v18_v0 }
   0x3   :  { %8 = vsyncpa [#allocation3], 0  ;;  %v15_v3 = vld [vmem:[%s189_s2] sm:$0xff]  ;;  %vm20_vm0 = vcmask 261120   ;;  %vm68_vm1 = vcmask 130048   ;;  %s145_s2 = smov [#allocation2]  }
   0x4   :  { %61 = vmatpush.msra.mxu1 %v17_v1  ;;  %37 = vmatpush.msra.mxu0 %v17_v1  ;;  %v44_v4 = vld [vmem:[%s188_s1] sm:$0x3]  ;;  %s103_s24 = sshll.u32 %s145_s2, 4  ;;  %s105_s27 = sshll.u32 %s190_s3, 4  ;;  %vm96_vm2 = vcmask 9216   ;;  %s104_s24 = int_to_ptr.vmem [resolvable:$true] %s103_s24  ;;  %s106_s27 = int_to_ptr.hbm [resolvable:$true] %s105_s27 }
   0x5   :  { %v19_v5 = vld [vmem:[%s187_s0] sm:$0x3] }
   0x6   :  { %62 = vmatpush.msra.mxu1 %v16_v2  ;;  %38 = vmatpush.msra.mxu0 %v16_v2 }
   0x8   :  { %63 = vmatpush.msra.mxu1 %v15_v3  ;;  %39 = vmatpush.msra.mxu0 %v15_v3 }
   0x9   :  { %115 = vmatmul.msk.f32.vlgmr.msra.gmra.mxu1 %vm20_vm0, %v44_v4  ;;  %114 = vmatmul.msk.f32.vlgmr.msra.gmra.mxu0 %vm20_vm0, %v19_v5 }
  0x86   :  { %v65_v6 = vpop.f32.mrf.mxu1  ;;  %v41_v7 = vpop.f32.mrf.mxu0 }
  0x87   :  { %116 = vmatpush.xpose.msk.msra.mxu2 %vm68_vm1, %v65_v6 }
  0x8a   :  { %117 = vmatmul.msk.f32.vlgmr.msra.gmra.mxu2 %vm68_vm1, %v41_v7 }
 0x10d   :  { %v92_v8 = vpop.f32.mrf.mxu2 }
 0x10e   :  { %v95_v9 = vmul.f32 0.010416667, %v92_v8 }
 0x110   :  { %97 = vst.msk [vmem:[#allocation2] sm:$0x3] %vm96_vm2, %v95_v9 }
 0x111   :  { %108 = dma.vmem_to_hbm [thread:$0]  %s104_s24, 32, %s106_s27, [#allocation3]  }
 0x112   :  { %143 = dma.done.wait [#allocation3], 32  }
 0x113   :  { %144 = vsyncadd [#allocation3], 4294967264 }
 0x114   :  { %113 = vsyncpa [#allocation3], 1 }

</bundles_post_ra>
